<compile_context>
chip_gen: v6e
topology: v6e:2x2x1
jax: 0.10.0
libtpu: 0.0.40
codegen_flags: <defaults>
</compile_context>

<pallas_src>
from copy import deepcopy

import jax
import jax.numpy as jnp
from jax import lax
from jax.experimental import pallas as pl
from jax.experimental.pallas import tpu as pltpu

EPS = 1e-5
MOMENTUM = 0.1

_CHUNK = 1024                  # in-kernel lane chunk (multiple of 128)
_TARGET_STEP_BYTES = 4 << 20   # ~4 MiB of HBM traffic per grid step
_MAX_TILE_HW = 1 << 18         # hard cap on the lane-axis tile
_MAX_BATCH_BLOCK = 8           # cap static unrolling over the batch axis
_VMEM_LIMIT = 32 << 20         # explicit scoped-VMEM budget (safe on v5e/v6e/v7x)


def _round_up(x, m):
    return ((x + m - 1) // m) * m


def _round_down(x, m):
    return (x // m) * m


def _pick_blocks(n, hw, bytes_per_pixel):
    """Choose (nb, tile): batch block and lane tile for one grid step.

    Sized so each step moves ~_TARGET_STEP_BYTES of HBM traffic (amortizes the
    per-step pipeline overhead) while the double-buffered blocks stay well
    inside VMEM on every generation (incl. v7x's 64 MiB)."""
    target_px = max(_CHUNK, _TARGET_STEP_BYTES // bytes_per_pixel)
    vmem_px = max(_CHUNK, (_VMEM_LIMIT // 3) // bytes_per_pixel)  # 2x buffers + slack
    target_px = min(target_px, vmem_px)
    if hw <= _CHUNK:
        tile = hw  # full extent along the lane axis: always a legal block
    else:
        tile = min(_round_down(hw, _CHUNK),
                   _round_up(target_px, _CHUNK),
                   _MAX_TILE_HW)
    nb = 1
    while (nb * 2 <= min(n, _MAX_BATCH_BLOCK) and n % (nb * 2) == 0
           and nb * 2 * tile <= target_px):
        nb *= 2
    return nb, tile


# ----------------------------------------------------------------------------
# Kernel 1: streaming batch-stat reduction over x (conv output never formed).
#   colsum = sum_m x[:, m]            -> (Cin, 1)
#   gram   = sum_m x[:, m] x[:, m]^T  -> (Cin, Cin)
# Per-core partial accumulators stay resident in VMEM across the whole
# (batch-block, hw-tile) sub-grid and are written back to HBM once.
# ----------------------------------------------------------------------------
def _make_stats_kernel(nb, cin, tile, hw, split_batch, tiles_per_core):
    chunk = tile if tile <= _CHUNK else _CHUNK
    n_chunks = tile // chunk
    ragged = (hw % tile) != 0

    def _reduce_bm(a):
        # (nb, cin, chunk) -> (1, cin, 1): lane reduce (VPU add tree + one XLU
        # step), then a cheap reduce over the leading batch dim.
        return jnp.sum(jnp.sum(a, axis=2, keepdims=True), axis=0, keepdims=True)

    def kernel(x_ref, colsum_ref, gram_ref):
        @pl.when(jnp.logical_and(pl.program_id(1) == 0, pl.program_id(2) == 0))
        def _init():
            colsum_ref[...] = jnp.zeros_like(colsum_ref)
            gram_ref[...] = jnp.zeros_like(gram_ref)

        if ragged:
            if split_batch:
                ht = pl.program_id(2)
            else:
                ht = pl.program_id(0) * tiles_per_core + pl.program_id(2)
            limit = hw - ht * tile  # valid lanes left in this tile
        else:
            limit = None

        def accumulate(xc, start):
            # xc: (nb, cin, chunk) float32; start: lane offset of this chunk.
            if ragged:
                lane = lax.broadcasted_iota(jnp.int32, (1, 1, xc.shape[-1]), 2)
                xc = jnp.where(start + lane < limit, xc, 0.0)
            cs = _reduce_bm(xc)                                   # (1, cin, 1)
            # Gram via Cin broadcasted VPU MACs (no MXU weight streaming, no
            # (Cin,TILE)->(TILE,Cin) transpose); symmetric so column order is
            # irrelevant.
            cols = [_reduce_bm(xc * xc[:, j:j + 1, :]) for j in range(cin)]
            return cs, jnp.concatenate(cols, axis=-1)             # (1, cin, cin)

        if n_chunks == 1:
            cs, g = accumulate(x_ref[...].astype(jnp.float32), 0)
        else:
            def body(ci, carry):
                cs_acc, g_acc = carry
                start = pl.multiple_of(ci * chunk, chunk)
                xc = x_ref[:, :, pl.ds(start, chunk)].astype(jnp.float32)
                cs, g = accumulate(xc, start)
                return cs_acc + cs, g_acc + g

            cs, g = lax.fori_loop(
                0, n_chunks, body,
                (jnp.zeros((1, cin, 1), jnp.float32),
                 jnp.zeros((1, cin, cin), jnp.float32)))

        colsum_ref[...] += cs
        gram_ref[...] += g

    return kernel


def _batch_stats(x3d):
    n, cin, hw = x3d.shape
    nb, tile = _pick_blocks(n, hw, cin * x3d.dtype.itemsize)
    nbb = n // nb                 # batch blocks
    nht = pl.cdiv(hw, tile)       # hw tiles
    # Leading "core" axis (parallel) with per-core partial accumulators so the
    # stats pass can shard across both TensorCores on v7x.
    if nbb % 2 == 0:
        ncores, split_batch = 2, True
    elif nht % 2 == 0:
        ncores, split_batch = 2, False
    else:
        ncores, split_batch = 1, True
    bpc = nbb // ncores if split_batch else nbb
    tpc = nht if split_batch else nht // ncores

    if split_batch:
        x_map = lambda c, b, t: (c * bpc + b, 0, t)
    else:
        x_map = lambda c, b, t: (b, 0, c * tpc + t)

    kernel = _make_stats_kernel(nb, cin, tile, hw, split_batch, tpc)
    colsum_p, gram_p = pl.pallas_call(
        kernel,
        out_shape=(jax.ShapeDtypeStruct((ncores, cin, 1), jnp.float32),
                   jax.ShapeDtypeStruct((ncores, cin, cin), jnp.float32)),
        grid=(ncores, bpc, tpc),
        in_specs=[pl.BlockSpec((nb, cin, tile), x_map)],
        out_specs=(pl.BlockSpec((1, cin, 1), lambda c, b, t: (c, 0, 0)),
                   pl.BlockSpec((1, cin, cin), lambda c, b, t: (c, 0, 0))),
        compiler_params=pltpu.CompilerParams(
            dimension_semantics=("parallel", "arbitrary", "arbitrary"),
            vmem_limit_bytes=_VMEM_LIMIT),
    )(x3d)
    # Combine per-core partials (tiny).
    return colsum_p.sum(axis=0), gram_p.sum(axis=0)   # (cin, 1), (cin, cin)


# ----------------------------------------------------------------------------
# Kernel 2: eval pass.  BN pre-folded into weight/bias; body is a small MXU
# matmul per chunk + bias + ReLU, all lane-dense; pass is DMA-bound.
# ----------------------------------------------------------------------------
def _make_eval_kernel(nb, cin, cout, tile, out_dtype):
    chunk = tile if tile <= _CHUNK else _CHUNK
    n_chunks = tile // chunk

    def kernel(x_ref, w_ref, b_ref, o_ref):
        w = w_ref[...]       # (cout, cin) f32, BN scale folded in
        bias = b_ref[...]    # (cout, 1)  f32, BN shift folded in

        def compute(xc):
            # xc: (nb, cin, chunk) f32 -> (nb, cout, chunk)
            outs = []
            for bi in range(nb):   # static, nb <= _MAX_BATCH_BLOCK
                y = jnp.dot(w, xc[bi], preferred_element_type=jnp.float32)  # MXU
                outs.append(jnp.maximum(y + bias, 0.0))
            return jnp.stack(outs, axis=0).astype(out_dtype)

        if n_chunks == 1:
            o_ref[...] = compute(x_ref[...].astype(jnp.float32))
        else:
            def body(ci, _):
                start = pl.multiple_of(ci * chunk, chunk)
                xc = x_ref[:, :, pl.ds(start, chunk)].astype(jnp.float32)
                o_ref[:, :, pl.ds(start, chunk)] = compute(xc)
                return 0

            lax.fori_loop(0, n_chunks, body, 0)

    return kernel


def _eval_forward(x3d, w_scaled, bias_col):
    n, cin, hw = x3d.shape
    cout = w_scaled.shape[0]
    nb, tile = _pick_blocks(n, hw, (cin + cout) * x3d.dtype.itemsize)
    grid = (n // nb, pl.cdiv(hw, tile))
    kernel = _make_eval_kernel(nb, cin, cout, tile, x3d.dtype)
    return pl.pallas_call(
        kernel,
        out_shape=jax.ShapeDtypeStruct((n, cout, hw), x3d.dtype),
        grid=grid,
        in_specs=[pl.BlockSpec((nb, cin, tile), lambda i, t: (i, 0, t)),
                  pl.BlockSpec((cout, cin), lambda i, t: (0, 0)),
                  pl.BlockSpec((cout, 1), lambda i, t: (0, 0))],
        out_specs=pl.BlockSpec((nb, cout, tile), lambda i, t: (i, 0, t)),
        compiler_params=pltpu.CompilerParams(
            dimension_semantics=("parallel", "parallel"),
            vmem_limit_bytes=_VMEM_LIMIT),
    )(x3d, w_scaled, bias_col)


# ----------------------------------------------------------------------------
# NormEMA wrapper (host-side glue; hot paths are the two kernels above).
# ----------------------------------------------------------------------------
class NormEMA:
    def __init__(self, params, episodic):
        # params: weight (Cout, Cin), gamma/beta/running_mean/running_var (Cout,)
        self.params = dict(params)
        self.episodic = episodic
        self.model_state_dict = deepcopy(
            {"running_mean": params["running_mean"],
             "running_var": params["running_var"]})

    def reset(self):
        self.params["running_mean"] = self.model_state_dict["running_mean"]
        self.params["running_var"] = self.model_state_dict["running_var"]

    def __call__(self, x_nchw):
        if self.episodic:
            self.reset()

        n, cin, h, w = x_nchw.shape
        weight = self.params["weight"].astype(jnp.float32)       # (Cout, Cin)
        cout = weight.shape[0]
        m = n * h * w

        # NCHW -> (N, Cin, H*W): pure reshape.  Kept in the caller's dtype; the
        # kernels upcast/accumulate in f32 internally (no extra HBM round trip).
        x3d = x_nchw.reshape(n, cin, h * w)

        # ---- model.train(); model(x): EMA update of the running stats --------
        colsum, gram = _batch_stats(x3d)                          # (Cin,1), (Cin,Cin)
        sum_y = (weight @ colsum)[:, 0]                           # (Cout,)
        sumsq_y = jnp.sum((weight @ gram) * weight, axis=1)       # diag(W G W^T)
        batch_mean = sum_y / m
        # One-pass variance E[y^2]-E[y]^2 in f32 (clamped); can lose precision
        # for activations with |mean| >> std, matching the single-read design.
        batch_var_biased = jnp.maximum(sumsq_y / m - batch_mean * batch_mean, 0.0)
        batch_var_unbiased = batch_var_biased * (m / max(m - 1, 1))  # PyTorch running_var
        self.params["running_mean"] = (
            (1.0 - MOMENTUM) * self.params["running_mean"] + MOMENTUM * batch_mean)
        self.params["running_var"] = (
            (1.0 - MOMENTUM) * self.params["running_var"] + MOMENTUM * batch_var_unbiased)

        # ---- model.eval(); model(x): fold BN into the 1x1 conv ---------------
        scale = self.params["gamma"] * jax.lax.rsqrt(self.params["running_var"] + EPS)
        bias = self.params["beta"] - self.params["running_mean"] * scale
        w_scaled = weight * scale[:, None]                        # (Cout, Cin)
        y3d = _eval_forward(x3d, w_scaled, bias.reshape(cout, 1).astype(jnp.float32))

        return y3d.reshape(n, cout, h, w)


if __name__ == "__main__":
    key = jax.random.PRNGKey(0)
    k_x, k_w = jax.random.split(key)

    N, CIN, H, W = 2, 4, 16, 16
    COUT = 8

    x = jax.random.normal(k_x, (N, CIN, H, W), dtype=jnp.float32)
    params = {
        "weight": 0.1 * jax.random.normal(k_w, (COUT, CIN), dtype=jnp.float32),
        "gamma": jnp.ones((COUT,), jnp.float32),
        "beta": jnp.zeros((COUT,), jnp.float32),
        "running_mean": jnp.zeros((COUT,), jnp.float32),
        "running_var": jnp.ones((COUT,), jnp.float32),
    }

    norm_ema = NormEMA(params, episodic=True)
    out = norm_ema(x)
    jax.block_until_ready(out)
    assert out.shape == (N, COUT, H, W)

    # pure-JAX reference (same NormEMA semantics) for a sanity check
    M = N * H * W
    xr = jnp.transpose(x, (0, 2, 3, 1)).reshape(M, CIN)
    yr = xr @ params["weight"].T
    bm = yr.mean(0)
    bv = yr.var(0) * (M / (M - 1))
    rm = (1.0 - MOMENTUM) * params["running_mean"] + MOMENTUM * bm
    rv = (1.0 - MOMENTUM) * params["running_var"] + MOMENTUM * bv
    ref = jnp.maximum(
        (yr - rm) * jax.lax.rsqrt(rv + EPS) * params["gamma"] + params["beta"], 0.0)
    ref = jnp.transpose(ref.reshape(N, H, W, COUT), (0, 3, 1, 2))
    assert bool(jnp.max(jnp.abs(out - ref)) < 1e-3)

    print("KERNEL_OK")
</pallas_src>

<mosaic_0001>
module attributes {stable_mosaic.version = 11 : i64} {
  func.func @kernel(%arg0: i32, %arg1: i32, %arg2: i32, %arg3: memref<2x4x256xf32, #tpu.memory_space<vmem>>, %arg4: memref<1x4x1xf32, #tpu.memory_space<vmem>>, %arg5: memref<1x4x4xf32, #tpu.memory_space<vmem>>) attributes {dimension_semantics = [#tpu.dimension_semantics<parallel>, #tpu.dimension_semantics<arbitrary>, #tpu.dimension_semantics<arbitrary>], iteration_bounds = array<i64: 1, 1, 1>, scalar_prefetch = 0 : i64, scratch_operands = 0 : i64, tpu.core_type = #tpu.core_type<tc>, window_params = [{transform_indices = @transform_0, window_bounds = array<i64: 2, 4, 256>}, {transform_indices = @transform_1, window_bounds = array<i64: 1, 4, 1>}, {transform_indices = @transform_2, window_bounds = array<i64: 1, 4, 4>}]} {
    %c0_i32 = arith.constant 0 : i32
    %0 = arith.cmpi eq, %arg1, %c0_i32 : i32
    %c0_i32_0 = arith.constant 0 : i32
    %1 = arith.cmpi eq, %arg2, %c0_i32_0 : i32
    %2 = arith.andi %0, %1 : i1
    %3 = arith.extui %2 : i1 to i32
    %c0_i32_1 = arith.constant 0 : i32
    %4 = arith.cmpi ne, %3, %c0_i32_1 : i32
    scf.if %4 {
      %cst_25 = arith.constant 0.000000e+00 : f32
      %45 = vector.broadcast %cst_25 : f32 to vector<1x4x1xf32>
      %c0_26 = arith.constant 0 : index
      %c0_27 = arith.constant 0 : index
      %c0_28 = arith.constant 0 : index
      %46 = vector.load %arg4[%c0_26, %c0_27, %c0_28] : memref<1x4x1xf32, #tpu.memory_space<vmem>>, vector<1x4x1xf32>
      tpu.vector_store %arg4[%c0_26, %c0_27, %c0_28], %45 {strides = array<i32>} : memref<1x4x1xf32, #tpu.memory_space<vmem>>, vector<1x4x1xf32>,
      %cst_29 = arith.constant 0.000000e+00 : f32
      %47 = vector.broadcast %cst_29 : f32 to vector<1x4x4xf32>
      %c0_30 = arith.constant 0 : index
      %c0_31 = arith.constant 0 : index
      %c0_32 = arith.constant 0 : index
      %48 = vector.load %arg5[%c0_30, %c0_31, %c0_32] : memref<1x4x4xf32, #tpu.memory_space<vmem>>, vector<1x4x4xf32>
      tpu.vector_store %arg5[%c0_30, %c0_31, %c0_32], %47 {strides = array<i32>} : memref<1x4x4xf32, #tpu.memory_space<vmem>>, vector<1x4x4xf32>,
    } else {
    }
    %c0 = arith.constant 0 : index
    %c0_2 = arith.constant 0 : index
    %c0_3 = arith.constant 0 : index
    %5 = vector.load %arg3[%c0, %c0_2, %c0_3] : memref<2x4x256xf32, #tpu.memory_space<vmem>>, vector<2x4x256xf32>
    %cst = arith.constant dense<0.000000e+00> : vector<2x4xf32>
    %6 = vector.multi_reduction <add>, %5, %cst [2] : vector<2x4x256xf32> to vector<2x4xf32>
    %7 = vector.shape_cast %6 : vector<2x4xf32> to vector<2x4x1xf32>
    %cst_4 = arith.constant dense<0.000000e+00> : vector<4x1xf32>
    %8 = vector.multi_reduction <add>, %7, %cst_4 [0] : vector<2x4x1xf32> to vector<4x1xf32>
    %9 = vector.shape_cast %8 : vector<4x1xf32> to vector<1x4x1xf32>
    %10 = vector.extract_strided_slice %5 {offsets = [0, 0, 0], sizes = [2, 1, 256], strides = [1, 1, 1]} : vector<2x4x256xf32> to vector<2x1x256xf32>
    %11 = vector.broadcast %10 : vector<2x1x256xf32> to vector<2x4x256xf32>
    %12 = arith.mulf %5, %11 : vector<2x4x256xf32>
    %cst_5 = arith.constant dense<0.000000e+00> : vector<2x4xf32>
    %13 = vector.multi_reduction <add>, %12, %cst_5 [2] : vector<2x4x256xf32> to vector<2x4xf32>
    %14 = vector.shape_cast %13 : vector<2x4xf32> to vector<2x4x1xf32>
    %cst_6 = arith.constant dense<0.000000e+00> : vector<4x1xf32>
    %15 = vector.multi_reduction <add>, %14, %cst_6 [0] : vector<2x4x1xf32> to vector<4x1xf32>
    %16 = vector.shape_cast %15 : vector<4x1xf32> to vector<1x4x1xf32>
    %17 = vector.extract_strided_slice %5 {offsets = [0, 1, 0], sizes = [2, 1, 256], strides = [1, 1, 1]} : vector<2x4x256xf32> to vector<2x1x256xf32>
    %18 = vector.broadcast %17 : vector<2x1x256xf32> to vector<2x4x256xf32>
    %19 = arith.mulf %5, %18 : vector<2x4x256xf32>
    %cst_7 = arith.constant dense<0.000000e+00> : vector<2x4xf32>
    %20 = vector.multi_reduction <add>, %19, %cst_7 [2] : vector<2x4x256xf32> to vector<2x4xf32>
    %21 = vector.shape_cast %20 : vector<2x4xf32> to vector<2x4x1xf32>
    %cst_8 = arith.constant dense<0.000000e+00> : vector<4x1xf32>
    %22 = vector.multi_reduction <add>, %21, %cst_8 [0] : vector<2x4x1xf32> to vector<4x1xf32>
    %23 = vector.shape_cast %22 : vector<4x1xf32> to vector<1x4x1xf32>
    %24 = vector.extract_strided_slice %5 {offsets = [0, 2, 0], sizes = [2, 1, 256], strides = [1, 1, 1]} : vector<2x4x256xf32> to vector<2x1x256xf32>
    %25 = vector.broadcast %24 : vector<2x1x256xf32> to vector<2x4x256xf32>
    %26 = arith.mulf %5, %25 : vector<2x4x256xf32>
    %cst_9 = arith.constant dense<0.000000e+00> : vector<2x4xf32>
    %27 = vector.multi_reduction <add>, %26, %cst_9 [2] : vector<2x4x256xf32> to vector<2x4xf32>
    %28 = vector.shape_cast %27 : vector<2x4xf32> to vector<2x4x1xf32>
    %cst_10 = arith.constant dense<0.000000e+00> : vector<4x1xf32>
    %29 = vector.multi_reduction <add>, %28, %cst_10 [0] : vector<2x4x1xf32> to vector<4x1xf32>
    %30 = vector.shape_cast %29 : vector<4x1xf32> to vector<1x4x1xf32>
    %31 = vector.extract_strided_slice %5 {offsets = [0, 3, 0], sizes = [2, 1, 256], strides = [1, 1, 1]} : vector<2x4x256xf32> to vector<2x1x256xf32>
    %32 = vector.broadcast %31 : vector<2x1x256xf32> to vector<2x4x256xf32>
    %33 = arith.mulf %5, %32 : vector<2x4x256xf32>
    %cst_11 = arith.constant dense<0.000000e+00> : vector<2x4xf32>
    %34 = vector.multi_reduction <add>, %33, %cst_11 [2] : vector<2x4x256xf32> to vector<2x4xf32>
    %35 = vector.shape_cast %34 : vector<2x4xf32> to vector<2x4x1xf32>
    %cst_12 = arith.constant dense<0.000000e+00> : vector<4x1xf32>
    %36 = vector.multi_reduction <add>, %35, %cst_12 [0] : vector<2x4x1xf32> to vector<4x1xf32>
    %37 = vector.shape_cast %36 : vector<4x1xf32> to vector<1x4x1xf32>
    %38 = tpu.concatenate %16, %23, %30, %37 in 2 : vector<1x4x1xf32>, vector<1x4x1xf32>, vector<1x4x1xf32>, vector<1x4x1xf32> -> vector<1x4x4xf32>
    %c0_13 = arith.constant 0 : index
    %c0_14 = arith.constant 0 : index
    %c0_15 = arith.constant 0 : index
    %39 = vector.load %arg4[%c0_13, %c0_14, %c0_15] : memref<1x4x1xf32, #tpu.memory_space<vmem>>, vector<1x4x1xf32>
    %40 = arith.addf %39, %9 : vector<1x4x1xf32>
    %c0_16 = arith.constant 0 : index
    %c0_17 = arith.constant 0 : index
    %c0_18 = arith.constant 0 : index
    %41 = vector.load %arg4[%c0_16, %c0_17, %c0_18] : memref<1x4x1xf32, #tpu.memory_space<vmem>>, vector<1x4x1xf32>
    tpu.vector_store %arg4[%c0_16, %c0_17, %c0_18], %40 {strides = array<i32>} : memref<1x4x1xf32, #tpu.memory_space<vmem>>, vector<1x4x1xf32>,
    %c0_19 = arith.constant 0 : index
    %c0_20 = arith.constant 0 : index
    %c0_21 = arith.constant 0 : index
    %42 = vector.load %arg5[%c0_19, %c0_20, %c0_21] : memref<1x4x4xf32, #tpu.memory_space<vmem>>, vector<1x4x4xf32>
    %43 = arith.addf %42, %38 : vector<1x4x4xf32>
    %c0_22 = arith.constant 0 : index
    %c0_23 = arith.constant 0 : index
    %c0_24 = arith.constant 0 : index
    %44 = vector.load %arg5[%c0_22, %c0_23, %c0_24] : memref<1x4x4xf32, #tpu.memory_space<vmem>>, vector<1x4x4xf32>
    tpu.vector_store %arg5[%c0_22, %c0_23, %c0_24], %43 {strides = array<i32>} : memref<1x4x4xf32, #tpu.memory_space<vmem>>, vector<1x4x4xf32>,
    return
  }
  func.func @transform_0(%arg0: i32, %arg1: i32, %arg2: i32) -> (i32, i32, i32) {
    %c1_i32 = arith.constant 1 : i32
    %0 = arith.muli %arg0, %c1_i32 : i32
    %1 = arith.addi %0, %arg1 : i32
    %c0_i32 = arith.constant 0 : i32
    %c0_i32_0 = arith.constant 0 : i32
    return %1, %c0_i32, %arg2 : i32, i32, i32
  }
  func.func @transform_1(%arg0: i32, %arg1: i32, %arg2: i32) -> (i32, i32, i32) {
    %c0_i32 = arith.constant 0 : i32
    %c0_i32_0 = arith.constant 0 : i32
    %c0_i32_1 = arith.constant 0 : i32
    return %arg0, %c0_i32, %c0_i32_0 : i32, i32, i32
  }
  func.func @transform_2(%arg0: i32, %arg1: i32, %arg2: i32) -> (i32, i32, i32) {
    %c0_i32 = arith.constant 0 : i32
    %c0_i32_0 = arith.constant 0 : i32
    %c0_i32_1 = arith.constant 0 : i32
    return %arg0, %c0_i32, %c0_i32_0 : i32, i32, i32
  }
}

</mosaic_0001>

<bundles_post_ra>
// kernel: tpu_custom_call.1
= control target key start
LH: loop header
LB: loop body
LE: loop exit
PB: predicated region body
PF: predicated region fallthrough
CT: control target
= control target key end

     0   :  { %8 = vsyncpa [#allocation3], 0  ;;  %s535_s0 = inlined_call_operand.hbm [shape: f32[2,4,256], index: 0, kind: input, shape index: {}]   ;;  %s536_s1 = inlined_call_operand.vmem [shape: f32[1,4,1], index: 1, kind: output, shape index: {0}]   ;;  %s537_s2 = inlined_call_operand.hbm [shape: f32[1,4,4], index: 2, kind: output, shape index: {1}]  }
   0x1   :  { %9 = vsyncpa [#allocation4], 0  ;;  %s408_s9 = smov [#allocation2]  }
   0x2   :  { %s20_s10 = sshll.u32 %s408_s9, 4  ;;  %s21_s10 = int_to_ptr.vmem [resolvable:$true] %s20_s10 }
   0x3   :  { %s372_s11 = scalar_lea.vmem %s21_s10, 256  ;;  %p377_p1 = scmp.lt.s32.totalorder %s21_s10, %s21_s10 }
   0x4   :  { %p373_p0 = scmp.ne.s32.totalorder %s21_s10, %s372_s11  ;;  %p378_p2 = scmp.lt.s32.totalorder %s372_s11, %s372_s11 }
   0x6   :  { %p379_p3 = por %p378_p2, %p377_p1 }
   0x8   :  { %p380_p4 = pnand %p379_p3, %p373_p0 }
   0xa   :  { %383 = shalt.err (!%p380_p4)
}
   0xb   :  { %s409_s12 = smov 128   ;;  %s410_s13 = smov 8  }
   0xc   :  { %26 = dma.hbm_to_vmem [thread:$0]  %s535_s0, 256, %s21_s10, [#allocation3], %s409_s12, %s409_s12, %s410_s13  }
   0xd   :  { %404 = dma.done.wait [#allocation3], 256  }
   0xe   :  { %405 = vsyncadd [#allocation3], 4294967040  ;;  %vm40_vm0 = vcmask 27648   ;;  %v64_v0 = vlaneseq  ;;  %v411_v1 = vmov 0.0   ;;  %vm50_vm1 = vcmask 1043456   ;;  %v439_v7 = vld [vmem:[#allocation2] sm:$0xff] }
   0xf   :  { %41 = vst.msk [vmem:[#allocation5] sm:$0xf] %vm40_vm0, %v411_v1  ;;  %v441_v8 = vld [vmem:[#allocation2 + $0x8] sm:$0xff]  ;;  %vm38_vm2 = vcmask 3072   ;;  %vm324_vm3 = vcmask 7168   ;;  %vm326_vm4 = vcmask 15360  }
  0x10   :  { %v433_v2 = vshrl.u32 %v64_v0, 7  ;;  %39 = vst.msk [vmem:[%s536_s1] sm:$0xf] %vm38_vm2, %v411_v1  ;;  %vm328_vm5 = vcmask 23552   ;;  %s412_s17 = smov [#allocation5]  }
  0x11   :  { %s346_s18 = sshll.u32 %s412_s17, 4  ;;  %s347_s18 = int_to_ptr.vmem [resolvable:$true] %s346_s18 }
  0x12   :  { %v131_v3 = vsub.s32 1, %v433_v2  ;;  %v135_v4 = vsub.s32 5, %v433_v2  ;;  %v66_v5 = vsub.s32 0, %v433_v2  ;;  %v70_v6 = vsub.s32 4, %v433_v2  ;;  %s384_s21 = scalar_lea.vmem %s347_s18, 64  ;;  %p389_p6 = scmp.lt.s32.totalorder %s347_s18, %s347_s18 }
  0x13   :  { %v196_v9 = vsub.s32 2, %v433_v2  ;;  %v200_v10 = vsub.s32 6, %v433_v2  ;;  %v446_v11 = vsub.s32 3, %v433_v2  ;;  %v265_v12 = vsub.s32 7, %v433_v2  ;;  %p385_p5 = scmp.ne.s32.totalorder %s347_s18, %s384_s21  ;;  %p390_p7 = scmp.lt.s32.totalorder %s384_s21, %s384_s21 }
  0x14   :  { %v132_v13 = vrot.slane %v439_v7, %v131_v3  ;;  %v136_v14 = vrot.slane %v439_v7, %v135_v4  ;;  %v67_v15 = vrot.slane %v439_v7, %v66_v5  ;;  %v71_v16 = vrot.slane %v439_v7, %v70_v6 }
  0x15   :  { %v140_v17 = vrot.slane %v441_v8, %v131_v3  ;;  %v144_v18 = vrot.slane %v441_v8, %v135_v4  ;;  %v75_v19 = vrot.slane %v441_v8, %v66_v5  ;;  %v79_v20 = vrot.slane %v441_v8, %v70_v6  ;;  %p391_p8 = por %p390_p7, %p389_p6 }
  0x16   :  { %v152_v21 = vrot.slane %v132_v13, %v131_v3  ;;  %v156_v22 = vrot.slane %v136_v14, %v131_v3  ;;  %v87_v23 = vrot.slane %v67_v15, %v66_v5  ;;  %v91_v24 = vrot.slane %v71_v16, %v66_v5 }
  0x17   :  { %v160_v25 = vrot.slane %v140_v17, %v131_v3  ;;  %v164_v26 = vrot.slane %v144_v18, %v131_v3  ;;  %v95_v27 = vrot.slane %v75_v19, %v66_v5  ;;  %v99_v28 = vrot.slane %v79_v20, %v66_v5  ;;  %p392_p9 = pnand %p391_p8, %p385_p5 }
  0x18   :  { %v169_v29 = vcombine.low %v152_v21, %v156_v22  ;;  %v104_v30 = vcombine.low %v87_v23, %v91_v24  ;;  %v205_v31 = vrot.slane %v441_v8, %v196_v9  ;;  %v209_v32 = vrot.slane %v441_v8, %v200_v10 }
  0x19   :  { %v170_v33 = vcombine.low %v160_v25, %v164_v26  ;;  %v105_v34 = vcombine.low %v95_v27, %v99_v28  ;;  %v197_v35 = vrot.slane %v439_v7, %v196_v9  ;;  %v201_v36 = vrot.slane %v439_v7, %v200_v10 }
  0x1a   :  { %v173_v37 = vmul.f32 %v169_v29, %v439_v7  ;;  %v108_v38 = vmul.f32 %v104_v30, %v439_v7  ;;  %v225_v39 = vrot.slane %v205_v31, %v196_v9  ;;  %v229_v40 = vrot.slane %v209_v32, %v196_v9 }
  0x1b   :  { %v174_v41 = vmul.f32 %v170_v33, %v441_v8  ;;  %v109_v42 = vmul.f32 %v105_v34, %v441_v8  ;;  %v217_v43 = vrot.slane %v197_v35, %v196_v9  ;;  %v221_v44 = vrot.slane %v201_v36, %v196_v9 }
  0x1c   :  { %v177_v45 = vcombine.high %v173_v37, %v173_v37  ;;  %v181_v46 = vsel %vm50_vm1, %v173_v37, 0.0  ;;  %v112_v47 = vcombine.high %v108_v38, %v108_v38  ;;  %v116_v48 = vsel %vm50_vm1, %v108_v38, 0.0 }
  0x1d   :  { %v178_v49 = vcombine.high %v174_v41, %v174_v41  ;;  %v186_v50 = vsel %vm50_vm1, %v174_v41, 0.0  ;;  %v113_v51 = vcombine.high %v109_v42, %v109_v42  ;;  %v121_v52 = vsel %vm50_vm1, %v109_v42, 0.0 }
  0x1e   :  { %v182_v53 = vsel %vm50_vm1, %v177_v45, 0.0  ;;  %v117_v54 = vsel %vm50_vm1, %v112_v47, 0.0  ;;  %v235_v55 = vcombine.low %v225_v39, %v229_v40  ;;  %v234_v56 = vcombine.low %v217_v43, %v221_v44 }
  0x1f   :  { %v183_v57 = vadd.f32 %v182_v53, %v181_v46  ;;  %v118_v58 = vadd.f32 %v117_v54, %v116_v48  ;;  %v187_v59 = vsel %vm50_vm1, %v178_v49, 0.0  ;;  %v122_v60 = vsel %vm50_vm1, %v113_v51, 0.0 }
  0x20   :  { %v188_v61 = vadd.f32 %v187_v59, %v186_v50  ;;  %v123_v62 = vadd.f32 %v122_v60, %v121_v52  ;;  %v239_v63 = vmul.f32 %v235_v55, %v441_v8  ;;  %v238_v0 = vmul.f32 %v234_v56, %v439_v7  ;;  %v334_v59 = vld [vmem:[#allocation5] sm:$0xf] }
  0x21   :  { %184 = vadd.xlane.f32.xlu1 %v183_v57  ;;  %119 = vadd.xlane.f32.xlu0 %v118_v58  ;;  %v270_v3 = vrot.slane %v441_v8, %v446_v11  ;;  %v274_v4 = vrot.slane %v441_v8, %v265_v12  ;;  %v262_v5 = vrot.slane %v439_v7, %v446_v11  ;;  %v51_v36 = vsel %vm50_vm1, %v439_v7, 0.0 }
  0x22   :  { %v243_v6 = vcombine.high %v239_v63, %v239_v63  ;;  %v251_v9 = vsel %vm50_vm1, %v239_v63, 0.0  ;;  %v242_v10 = vcombine.high %v238_v0, %v238_v0  ;;  %v246_v13 = vsel %vm50_vm1, %v238_v0, 0.0 }
  0x23   :  { %v290_v14 = vrot.slane %v270_v3, %v446_v11  ;;  %v294_v15 = vrot.slane %v274_v4, %v446_v11  ;;  %v266_v16 = vrot.slane %v439_v7, %v265_v12  ;;  %v282_v19 = vrot.slane %v262_v5, %v446_v11  ;;  %v330_v4 = vld [vmem:[%s536_s1] sm:$0xf] }
  0x24   :  { %v252_v17 = vsel %vm50_vm1, %v243_v6, 0.0  ;;  %v247_v18 = vsel %vm50_vm1, %v242_v10, 0.0  ;;  %v47_v2 = vcombine.high %v441_v8, %v441_v8  ;;  %v46_v28 = vcombine.high %v439_v7, %v439_v7 }
  0x25   :  { %189 = vadd.xlane.f32.xlu1 %v188_v61  ;;  %124 = vadd.xlane.f32.xlu0 %v123_v62  ;;  %v253_v20 = vadd.f32 %v252_v17, %v251_v9  ;;  %v248_v21 = vadd.f32 %v247_v18, %v246_v13  ;;  %v300_v22 = vcombine.low %v290_v14, %v294_v15 }
  0x26   :  { %v286_v23 = vrot.slane %v266_v16, %v446_v11  ;;  %v56_v11 = vsel %vm50_vm1, %v441_v8, 0.0  ;;  %v57_v30 = vsel %vm50_vm1, %v47_v2, 0.0  ;;  %v52_v37 = vsel %vm50_vm1, %v46_v28, 0.0 }
  0x27   :  { %v304_v24 = vmul.f32 %v300_v22, %v441_v8  ;;  %v58_v35 = vadd.f32 %v57_v30, %v56_v11  ;;  %v53_v39 = vadd.f32 %v52_v37, %v51_v36 }
  0x28   :  { %v299_v25 = vcombine.low %v282_v19, %v286_v23 }
  0x29   :  { %254 = vadd.xlane.f32.xlu1 %v253_v20  ;;  %249 = vadd.xlane.f32.xlu0 %v248_v21  ;;  %v308_v12 = vcombine.high %v304_v24, %v304_v24  ;;  %v316_v26 = vsel %vm50_vm1, %v304_v24, 0.0 }
  0x2a   :  { %v303_v27 = vmul.f32 %v299_v25, %v439_v7 }
  0x2b   :  { %v317_v29 = vsel %vm50_vm1, %v308_v12, 0.0 }
  0x2c   :  { %v318_v31 = vadd.f32 %v317_v29, %v316_v26  ;;  %v307_v32 = vcombine.high %v303_v27, %v303_v27  ;;  %v311_v33 = vsel %vm50_vm1, %v303_v27, 0.0 }
  0x2e   :  { %319 = vadd.xlane.f32.xlu1 %v318_v31  ;;  %v312_v34 = vsel %vm50_vm1, %v307_v32, 0.0 }
  0x2f   :  { %v313_v38 = vadd.f32 %v312_v34, %v311_v33 }
  0x31   :  { %314 = vadd.xlane.f32.xlu0 %v313_v38 }
  0x32   :  { %59 = vadd.xlane.f32.xlu1 %v58_v35 }
  0x35   :  { %54 = vadd.xlane.f32.xlu0 %v53_v39 }
  0xaa   :  { %v185_v8 = vpop.xlane.xlu1 %184  ;;  %v120_v40 = vpop.xlane.xlu0 %119 }
  0xab   :  { %v191_v48 = vsel %vm50_vm1, %v185_v8, 0.0  ;;  %v126_v49 = vsel %vm50_vm1, %v120_v40, 0.0 }
  0xae   :  { %v190_v41 = vpop.xlane.xlu1 %189  ;;  %v125_v42 = vpop.xlane.xlu0 %124 }
  0xaf   :  { %v192_v44 = vsel %vm50_vm1, %v190_v41, 0.0  ;;  %v127_v45 = vsel %vm50_vm1, %v125_v42, 0.0 }
  0xb0   :  { %v193_v1 = vadd.f32 %v192_v44, %v191_v48  ;;  %v128_v51 = vadd.f32 %v127_v45, %v126_v49 }
  0xb2   :  { %v255_v43 = vpop.xlane.xlu1 %254  ;;  %v250_v7 = vpop.xlane.xlu0 %249  ;;  %v325_v57 = vsel %vm324_vm3, %v128_v51, %v193_v1 }
  0xb3   :  { %v257_v46 = vsel %vm50_vm1, %v255_v43, 0.0  ;;  %v256_v47 = vsel %vm50_vm1, %v250_v7, 0.0 }
  0xb4   :  { %v258_v52 = vadd.f32 %v257_v46, %v256_v47 }
  0xb6   :  { %v327_v60 = vsel %vm326_vm4, %v325_v57, %v258_v52 }
  0xb7   :  { %v320_v50 = vpop.xlane.xlu1 %319 }
  0xb8   :  { %v322_v53 = vsel %vm50_vm1, %v320_v50, 0.0 }
  0xba   :  { %v315_v54 = vpop.xlane.xlu0 %314 }
  0xbb   :  { %v321_v55 = vsel %vm50_vm1, %v315_v54, 0.0  ;;  %v60_v56 = vpop.xlane.xlu1 %59 }
  0xbc   :  { %v323_v58 = vadd.f32 %v322_v53, %v321_v55  ;;  %v62_v61 = vsel %vm50_vm1, %v60_v56, 0.0 }
  0xbe   :  { %v329_v62 = vsel %vm328_vm5, %v327_v60, %v323_v58  ;;  %v55_v63 = vpop.xlane.xlu0 %54 }
  0xbf   :  { %v335_v0 = vadd.f32 %v334_v59, %v329_v62  ;;  %v61_v3 = vsel %vm50_vm1, %v55_v63, 0.0 }
  0xc0   :  { %v63_v5 = vadd.f32 %v62_v61, %v61_v3 }
  0xc1   :  { %337 = vst.msk [vmem:[#allocation5] sm:$0xf] %vm40_vm0, %v335_v0 }
  0xc2   :  { %v331_v6 = vadd.f32 %v330_v4, %v63_v5 }
  0xc3   :  { %395 = shalt.err (!%p392_p9)
}
  0xc4   :  { %349 = dma.vmem_to_hbm [thread:$0]  %s347_s18, 64, %s537_s2, [#allocation4]   ;;  %333 = vst.msk [vmem:[%s536_s1] sm:$0xf] %vm38_vm2, %v331_v6 }
  0xc5   :  { %406 = dma.done.wait [#allocation4], 64  }
  0xc6   :  { %407 = vsyncadd [#allocation4], 4294967232 }
  0xc7   :  { %355 = vsyncpa [#allocation3], 1 }
  0xc8   :  { %356 = vsyncpa [#allocation4], 1 }

</bundles_post_ra>
